<compile_context>
chip_gen: v7x
topology: tpu7x:2x2x1
jax: 0.10.0
libtpu: 0.0.40
codegen_flags: <defaults>
</compile_context>

<pallas_src>
import jax
import jax.numpy as jnp
from jax.experimental import pallas as pl
from jax.experimental.pallas import tpu as pltpu


# ---------------------------------------------------------------------------
# Fused kernel: motion_fc_in -> depth x MLPblock -> motion_fc_out, batch-folded (M, S) layout.
# ---------------------------------------------------------------------------
def _csimlpe_fused_kernel(x_ref, mod_ref, fcin_wt_ref, fcin_b_ref,
                          fc0_wt_ref, fc0_b_ref, fcout_wt_ref, fcout_b_ref,
                          o_ref):
    Bblk, D, S = x_ref.shape
    M = Bblk * D
    depth = fc0_wt_ref.shape[0]

    # motion_fc_in (temporal_fc_in=False): Linear(seq, seq) on the seq (lane) axis.
    # Batch folded into the M dimension of a single (M, S) @ (S, S) matmul.
    x2 = x_ref[...].reshape(M, S)
    h = (jnp.dot(x2.astype(jnp.bfloat16), fcin_wt_ref[...],
                 preferred_element_type=jnp.float32)
         + fcin_b_ref[...])                                           # (M, S) f32

    # Precomputed (wrapper-side) adaLN modulation with LN affine already folded in.
    # Layout: (Bblk, depth*3*D, 1); layer l -> [shift | scale | gate] blocks of D rows each.
    mod = mod_ref[...]                                                # load once, tiny

    for l in range(depth):  # small static depth -> fully unrolled
        base = l * 3 * D
        shift = mod[:, base:base + D].reshape(M, 1)
        scale = mod[:, base + D:base + 2 * D].reshape(M, 1)
        gate = mod[:, base + 2 * D:base + 3 * D].reshape(M, 1)

        # LayerNorm over the feature (D) axis within each batch element, eps = 1e-5.
        # One-pass statistics; affine (ln_w, ln_b) is folded into scale/shift above.
        h3 = h.reshape(Bblk, D, S)
        mu = jnp.mean(h3, axis=1, keepdims=True)                      # (Bblk, 1, S)
        ex2 = jnp.mean(h3 * h3, axis=1, keepdims=True)                # (Bblk, 1, S)
        inv = jax.lax.rsqrt(ex2 - mu * mu + 1e-5)
        nrm = (h3 * inv - mu * inv).reshape(M, S)                     # normalized, no affine

        x_ = nrm * scale + shift                                      # folded modulate
        # fc0 mixes the seq axis: (M, S) @ (S, S), lane-dense N = S, bf16 MXU issue.
        fc = (jnp.dot(x_.astype(jnp.bfloat16), fc0_wt_ref[l],
                      preferred_element_type=jnp.float32)
              + fc0_b_ref[l])                                         # + (1, S) lane-dense bias
        h = h + gate * fc                                             # residual w/ gate

    # motion_fc_out (temporal_fc_out=False): Linear(seq, seq) on the seq axis.
    out = (jnp.dot(h.astype(jnp.bfloat16), fcout_wt_ref[...],
                   preferred_element_type=jnp.float32)
           + fcout_b_ref[...])
    o_ref[...] = out.reshape(Bblk, D, S).astype(o_ref.dtype)


def csimlpe_forward(x, mod_flat, pk, target_rows=256):
    B, D, S = x.shape
    depth = pk["fc0_wt"].shape[0]

    # Fold as many batch elements per grid step as fit ~target_rows MXU rows.
    # (On v7x with larger B this still yields >=2 "parallel" steps for both TensorCores;
    #  at B=2 we prioritize the M-fold since the kernel is grid-overhead bound.)
    bblk = max(1, min(B, target_rows // max(D, 1)))
    while B % bblk:
        bblk -= 1
    grid = (B // bblk,)

    def rep(shape):  # weight replicated across the batch grid (DMA'd once, stays resident)
        return pl.BlockSpec(shape, lambda i: (0,) * len(shape))

    return pl.pallas_call(
        _csimlpe_fused_kernel,
        out_shape=jax.ShapeDtypeStruct((B, D, S), x.dtype),
        grid=grid,
        in_specs=[
            pl.BlockSpec((bblk, D, S), lambda i: (i, 0, 0)),          # x  (per-step batch block)
            pl.BlockSpec((bblk, 3 * depth * D, 1), lambda i: (i, 0, 0)),  # precomputed modulation
            rep((S, S)), rep((1, S)),                                 # fc_in (bf16, pre-T) + bias
            rep((depth, S, S)), rep((depth, 1, S)),                   # fc0 (bf16, pre-T) + bias
            rep((S, S)), rep((1, S)),                                 # fc_out (bf16, pre-T) + bias
        ],
        out_specs=pl.BlockSpec((bblk, D, S), lambda i: (i, 0, 0)),
        compiler_params=pltpu.CompilerParams(dimension_semantics=("parallel",)),
    )(x, mod_flat, pk["fc_in_wt"], pk["fc_in_b"],
      pk["fc0_wt"], pk["fc0_b"], pk["fc_out_wt"], pk["fc_out_b"])


# ---------------------------------------------------------------------------
# Full model forward (eval mode: no label dropout, no AMP).
# ---------------------------------------------------------------------------
def model_forward(x, y_labels, pk):
    B = x.shape[0]
    depth, D = pk["ln_w"].shape

    # LabelEmbedder (eval: no token_drop) + SiLU — batch-only glue work.
    emb = pk["emb"][y_labels]                                    # (B, D)
    s = emb * jax.nn.sigmoid(emb)

    # adaLN modulation precomputed here (tiny (B, depth, 3D) matmul), LN affine folded in.
    mod = jnp.einsum("bd,lde->ble", s, pk["ada_wt"]) + pk["ada_b"][None]   # (B, depth, 3D)
    shift, scale, gate = jnp.split(mod, 3, axis=-1)                        # each (B, depth, D)
    scale_eff = pk["ln_w"][None] * (1.0 + scale)
    shift_eff = shift + pk["ln_b"][None] * (1.0 + scale)                   # incl. ln_b*scale cross-term
    mod_k = jnp.stack([shift_eff, scale_eff, gate], axis=2)                # (B, depth, 3, D)
    mod_flat = mod_k.reshape(B, 3 * depth * D, 1).astype(jnp.float32)

    return csimlpe_forward(x, mod_flat, pk)


# ---------------------------------------------------------------------------
# Parameter packing: math-layout params -> kernel (lane-dense / stacked / bf16) layout.
# ---------------------------------------------------------------------------
def pack_params(p):
    pk = {
        "emb": p["emb"],
        "fc_in_wt": p["fc_in_wt"].astype(jnp.bfloat16),
        "fc_in_b": p["fc_in_b"],                                            # (1, S) f32
        "fc_out_wt": p["fc_out_wt"].astype(jnp.bfloat16),
        "fc_out_b": p["fc_out_b"],                                          # (1, S) f32
        "ada_wt": jnp.stack([L["ada_wt"] for L in p["layers"]]),            # (depth, D, 3D)
        "ada_b": jnp.stack([L["ada_b"][0] for L in p["layers"]]),           # (depth, 3D)
        "ln_w": jnp.stack([L["ln_w"][0] for L in p["layers"]]),             # (depth, D)
        "ln_b": jnp.stack([L["ln_b"][0] for L in p["layers"]]),             # (depth, D)
        "fc0_wt": jnp.stack([L["fc0_w"].T for L in p["layers"]]).astype(jnp.bfloat16),  # (depth, S, S)
        "fc0_b": jnp.stack([L["fc0_b"].T for L in p["layers"]]),            # (depth, 1, S)
    }
    return pk


# ---------------------------------------------------------------------------
# Pure-JAX reference (original math layout, full f32) + init.
# ---------------------------------------------------------------------------
def reference_forward(x, y_labels, p):
    y_emb = p["emb"][y_labels]
    h = x @ p["fc_in_wt"] + p["fc_in_b"][0]
    h = jnp.transpose(h, (0, 2, 1))
    for L in p["layers"]:
        s = jax.nn.silu(y_emb)
        mod = s @ L["ada_wt"] + L["ada_b"][0]
        shift, scale, gate = jnp.split(mod, 3, axis=-1)
        mu = h.mean(-1, keepdims=True)
        var = ((h - mu) ** 2).mean(-1, keepdims=True)
        hn = (h - mu) * jax.lax.rsqrt(var + 1e-5) * L["ln_w"][0] + L["ln_b"][0]
        x_ = hn * (1.0 + scale[:, None, :]) + shift[:, None, :]
        fc = jnp.einsum("st,btd->bsd", L["fc0_w"], x_) + L["fc0_b"][:, 0][None, :, None]
        h = h + gate[:, None, :] * fc
    h = jnp.transpose(h, (0, 2, 1))
    return h @ p["fc_out_wt"] + p["fc_out_b"][0]


def init_params(key, num_classes, dim, seq, depth):
    keys = iter(jax.random.split(key, 64))
    p = {}
    # LabelEmbedder: dropout_prob > 0 -> (num_classes + 1) rows, std=0.02.
    p["emb"] = 0.02 * jax.random.normal(next(keys), (num_classes + 1, dim), jnp.float32)
    p["fc_in_wt"] = 0.05 * jax.random.normal(next(keys), (seq, seq), jnp.float32)
    p["fc_in_b"] = 0.01 * jax.random.normal(next(keys), (1, seq), jnp.float32)
    # motion_fc_out: reset_parameters -> xavier(gain=1e-8) ~ tiny weights, zero bias.
    p["fc_out_wt"] = 1e-4 * jax.random.normal(next(keys), (seq, seq), jnp.float32)
    p["fc_out_b"] = jnp.zeros((1, seq), jnp.float32)
    layers = []
    for _ in range(depth):
        layers.append(dict(
            ada_wt=0.05 * jax.random.normal(next(keys), (dim, 3 * dim), jnp.float32),
            ada_b=0.01 * jax.random.normal(next(keys), (1, 3 * dim), jnp.float32),
            ln_w=jnp.ones((1, dim), jnp.float32),
            ln_b=jnp.zeros((1, dim), jnp.float32),
            fc0_w=0.05 * jax.random.normal(next(keys), (seq, seq), jnp.float32),
            fc0_b=0.01 * jax.random.normal(next(keys), (seq, 1), jnp.float32),
        ))
    p["layers"] = layers
    return p


if __name__ == "__main__":
    B = 2
    dim = 16          # DATA.input_size[-3]
    seq = 16 * 8      # DATA.input_size[-2] * DATA.input_size[-1]
    depth = 2         # MODEL.depth
    num_classes = 10  # DATA.num_classes

    key = jax.random.PRNGKey(0)
    kx, ky, kp = jax.random.split(key, 3)
    x = jax.random.normal(kx, (B, dim, seq), jnp.float32)
    y = jax.random.randint(ky, (B,), 0, num_classes)
    params = init_params(kp, num_classes, dim, seq, depth)
    packed = pack_params(params)   # one-time repack into kernel layout (outside the jit)

    out = jax.jit(lambda xx, yy: model_forward(xx, yy, packed))(x, y)
    out = jax.block_until_ready(out)

    ref = reference_forward(x, y, params)
    assert out.shape == (B, dim, seq), out.shape
    max_err = float(jnp.max(jnp.abs(out - ref)))
    assert max_err < 2e-3, f"mismatch vs reference, max abs err = {max_err}"
    print("KERNEL_OK")
</pallas_src>

<mosaic_0001>
module attributes {stable_mosaic.version = 11 : i64} {
  func.func @_csimlpe_fused_kernel(%arg0: i32, %arg1: memref<2x16x128xf32, #tpu.memory_space<vmem>>, %arg2: memref<2x96x1xf32, #tpu.memory_space<vmem>>, %arg3: memref<128x128xbf16, #tpu.memory_space<vmem>>, %arg4: memref<1x128xf32, #tpu.memory_space<vmem>>, %arg5: memref<2x128x128xbf16, #tpu.memory_space<vmem>>, %arg6: memref<2x1x128xf32, #tpu.memory_space<vmem>>, %arg7: memref<128x128xbf16, #tpu.memory_space<vmem>>, %arg8: memref<1x128xf32, #tpu.memory_space<vmem>>, %arg9: memref<2x16x128xf32, #tpu.memory_space<vmem>>) attributes {dimension_semantics = [#tpu.dimension_semantics<parallel>], iteration_bounds = array<i64: 1>, scalar_prefetch = 0 : i64, scratch_operands = 0 : i64, tpu.core_type = #tpu.core_type<tc>, window_params = [{transform_indices = @transform_0, window_bounds = array<i64: 2, 16, 128>}, {transform_indices = @transform_1, window_bounds = array<i64: 2, 96, 1>}, {pipeline_mode = #tpu.pipeline_mode<synchronous>, transform_indices = @transform_2, window_bounds = array<i64: 128, 128>}, {pipeline_mode = #tpu.pipeline_mode<synchronous>, transform_indices = @transform_3, window_bounds = array<i64: 1, 128>}, {pipeline_mode = #tpu.pipeline_mode<synchronous>, transform_indices = @transform_4, window_bounds = array<i64: 2, 128, 128>}, {pipeline_mode = #tpu.pipeline_mode<synchronous>, transform_indices = @transform_5, window_bounds = array<i64: 2, 1, 128>}, {pipeline_mode = #tpu.pipeline_mode<synchronous>, transform_indices = @transform_6, window_bounds = array<i64: 128, 128>}, {pipeline_mode = #tpu.pipeline_mode<synchronous>, transform_indices = @transform_7, window_bounds = array<i64: 1, 128>}, {transform_indices = @transform_8, window_bounds = array<i64: 2, 16, 128>}]} {
    %c0 = arith.constant 0 : index
    %c0_0 = arith.constant 0 : index
    %c0_1 = arith.constant 0 : index
    %0 = vector.load %arg1[%c0, %c0_0, %c0_1] : memref<2x16x128xf32, #tpu.memory_space<vmem>>, vector<2x16x128xf32>
    %1 = vector.shape_cast %0 : vector<2x16x128xf32> to vector<32x128xf32>
    %2 = arith.truncf %1 : vector<32x128xf32> to vector<32x128xbf16>
    %c0_2 = arith.constant 0 : index
    %c0_3 = arith.constant 0 : index
    %3 = vector.load %arg3[%c0_2, %c0_3] : memref<128x128xbf16, #tpu.memory_space<vmem>>, vector<128x128xbf16>
    %cst = arith.constant dense<0.000000e+00> : vector<32x128xf32>
    %4 = tpu.matmul %2, %3, %cst {dimension_numbers = #tpu.dot_dimension_numbers<[1], [0], [0], [1], [0, 0, 1, 1], [], []>} : vector<32x128xbf16>, vector<128x128xbf16>, vector<32x128xf32> -> vector<32x128xf32>
    %c0_4 = arith.constant 0 : index
    %c0_5 = arith.constant 0 : index
    %5 = vector.load %arg4[%c0_4, %c0_5] : memref<1x128xf32, #tpu.memory_space<vmem>>, vector<1x128xf32>
    %6 = vector.broadcast %5 : vector<1x128xf32> to vector<32x128xf32>
    %7 = arith.addf %4, %6 : vector<32x128xf32>
    %c0_6 = arith.constant 0 : index
    %c0_7 = arith.constant 0 : index
    %c0_8 = arith.constant 0 : index
    %8 = vector.load %arg2[%c0_6, %c0_7, %c0_8] : memref<2x96x1xf32, #tpu.memory_space<vmem>>, vector<2x96x1xf32>
    %9 = vector.extract_strided_slice %8 {offsets = [0, 0, 0], sizes = [2, 16, 1], strides = [1, 1, 1]} : vector<2x96x1xf32> to vector<2x16x1xf32>
    %10 = vector.shape_cast %9 : vector<2x16x1xf32> to vector<32x1xf32>
    %11 = vector.extract_strided_slice %8 {offsets = [0, 16, 0], sizes = [2, 16, 1], strides = [1, 1, 1]} : vector<2x96x1xf32> to vector<2x16x1xf32>
    %12 = vector.shape_cast %11 : vector<2x16x1xf32> to vector<32x1xf32>
    %13 = vector.extract_strided_slice %8 {offsets = [0, 32, 0], sizes = [2, 16, 1], strides = [1, 1, 1]} : vector<2x96x1xf32> to vector<2x16x1xf32>
    %14 = vector.shape_cast %13 : vector<2x16x1xf32> to vector<32x1xf32>
    %15 = vector.shape_cast %7 : vector<32x128xf32> to vector<2x16x128xf32>
    %cst_9 = arith.constant dense<0.000000e+00> : vector<2x128xf32>
    %16 = vector.multi_reduction <add>, %15, %cst_9 [1] : vector<2x16x128xf32> to vector<2x128xf32>
    %17 = vector.shape_cast %16 : vector<2x128xf32> to vector<2x1x128xf32>
    %cst_10 = arith.constant 1.600000e+01 : f32
    %18 = vector.broadcast %cst_10 : f32 to vector<2x1x128xf32>
    %19 = arith.divf %17, %18 : vector<2x1x128xf32>
    %20 = arith.mulf %15, %15 : vector<2x16x128xf32>
    %cst_11 = arith.constant dense<0.000000e+00> : vector<2x128xf32>
    %21 = vector.multi_reduction <add>, %20, %cst_11 [1] : vector<2x16x128xf32> to vector<2x128xf32>
    %22 = vector.shape_cast %21 : vector<2x128xf32> to vector<2x1x128xf32>
    %cst_12 = arith.constant 1.600000e+01 : f32
    %23 = vector.broadcast %cst_12 : f32 to vector<2x1x128xf32>
    %24 = arith.divf %22, %23 : vector<2x1x128xf32>
    %25 = arith.mulf %19, %19 : vector<2x1x128xf32>
    %26 = arith.subf %24, %25 : vector<2x1x128xf32>
    %cst_13 = arith.constant 9.99999974E-6 : f32
    %27 = vector.broadcast %cst_13 : f32 to vector<2x1x128xf32>
    %28 = arith.addf %26, %27 : vector<2x1x128xf32>
    %29 = math.rsqrt %28 : vector<2x1x128xf32>
    %30 = vector.broadcast %29 : vector<2x1x128xf32> to vector<2x16x128xf32>
    %31 = arith.mulf %15, %30 : vector<2x16x128xf32>
    %32 = arith.mulf %19, %29 : vector<2x1x128xf32>
    %33 = vector.broadcast %32 : vector<2x1x128xf32> to vector<2x16x128xf32>
    %34 = arith.subf %31, %33 : vector<2x16x128xf32>
    %35 = vector.shape_cast %34 : vector<2x16x128xf32> to vector<32x128xf32>
    %36 = vector.broadcast %12 : vector<32x1xf32> to vector<32x128xf32>
    %37 = arith.mulf %35, %36 : vector<32x128xf32>
    %38 = vector.broadcast %10 : vector<32x1xf32> to vector<32x128xf32>
    %39 = arith.addf %37, %38 : vector<32x128xf32>
    %40 = arith.truncf %39 : vector<32x128xf32> to vector<32x128xbf16>
    %c0_14 = arith.constant 0 : index
    %c0_15 = arith.constant 0 : index
    %c0_16 = arith.constant 0 : index
    %41 = vector.load %arg5[%c0_14, %c0_15, %c0_16] : memref<2x128x128xbf16, #tpu.memory_space<vmem>>, vector<1x128x128xbf16>
    %42 = vector.shape_cast %41 : vector<1x128x128xbf16> to vector<128x128xbf16>
    %cst_17 = arith.constant dense<0.000000e+00> : vector<32x128xf32>
    %43 = tpu.matmul %40, %42, %cst_17 {dimension_numbers = #tpu.dot_dimension_numbers<[1], [0], [0], [1], [0, 0, 1, 1], [], []>} : vector<32x128xbf16>, vector<128x128xbf16>, vector<32x128xf32> -> vector<32x128xf32>
    %c0_18 = arith.constant 0 : index
    %c0_19 = arith.constant 0 : index
    %c0_20 = arith.constant 0 : index
    %44 = vector.load %arg6[%c0_18, %c0_19, %c0_20] : memref<2x1x128xf32, #tpu.memory_space<vmem>>, vector<1x1x128xf32>
    %45 = vector.shape_cast %44 : vector<1x1x128xf32> to vector<1x128xf32>
    %46 = vector.broadcast %45 : vector<1x128xf32> to vector<32x128xf32>
    %47 = arith.addf %43, %46 : vector<32x128xf32>
    %48 = vector.broadcast %14 : vector<32x1xf32> to vector<32x128xf32>
    %49 = arith.mulf %48, %47 : vector<32x128xf32>
    %50 = arith.addf %7, %49 : vector<32x128xf32>
    %51 = vector.extract_strided_slice %8 {offsets = [0, 48, 0], sizes = [2, 16, 1], strides = [1, 1, 1]} : vector<2x96x1xf32> to vector<2x16x1xf32>
    %52 = vector.shape_cast %51 : vector<2x16x1xf32> to vector<32x1xf32>
    %53 = vector.extract_strided_slice %8 {offsets = [0, 64, 0], sizes = [2, 16, 1], strides = [1, 1, 1]} : vector<2x96x1xf32> to vector<2x16x1xf32>
    %54 = vector.shape_cast %53 : vector<2x16x1xf32> to vector<32x1xf32>
    %55 = vector.extract_strided_slice %8 {offsets = [0, 80, 0], sizes = [2, 16, 1], strides = [1, 1, 1]} : vector<2x96x1xf32> to vector<2x16x1xf32>
    %56 = vector.shape_cast %55 : vector<2x16x1xf32> to vector<32x1xf32>
    %57 = vector.shape_cast %50 : vector<32x128xf32> to vector<2x16x128xf32>
    %cst_21 = arith.constant dense<0.000000e+00> : vector<2x128xf32>
    %58 = vector.multi_reduction <add>, %57, %cst_21 [1] : vector<2x16x128xf32> to vector<2x128xf32>
    %59 = vector.shape_cast %58 : vector<2x128xf32> to vector<2x1x128xf32>
    %cst_22 = arith.constant 1.600000e+01 : f32
    %60 = vector.broadcast %cst_22 : f32 to vector<2x1x128xf32>
    %61 = arith.divf %59, %60 : vector<2x1x128xf32>
    %62 = arith.mulf %57, %57 : vector<2x16x128xf32>
    %cst_23 = arith.constant dense<0.000000e+00> : vector<2x128xf32>
    %63 = vector.multi_reduction <add>, %62, %cst_23 [1] : vector<2x16x128xf32> to vector<2x128xf32>
    %64 = vector.shape_cast %63 : vector<2x128xf32> to vector<2x1x128xf32>
    %cst_24 = arith.constant 1.600000e+01 : f32
    %65 = vector.broadcast %cst_24 : f32 to vector<2x1x128xf32>
    %66 = arith.divf %64, %65 : vector<2x1x128xf32>
    %67 = arith.mulf %61, %61 : vector<2x1x128xf32>
    %68 = arith.subf %66, %67 : vector<2x1x128xf32>
    %cst_25 = arith.constant 9.99999974E-6 : f32
    %69 = vector.broadcast %cst_25 : f32 to vector<2x1x128xf32>
    %70 = arith.addf %68, %69 : vector<2x1x128xf32>
    %71 = math.rsqrt %70 : vector<2x1x128xf32>
    %72 = vector.broadcast %71 : vector<2x1x128xf32> to vector<2x16x128xf32>
    %73 = arith.mulf %57, %72 : vector<2x16x128xf32>
    %74 = arith.mulf %61, %71 : vector<2x1x128xf32>
    %75 = vector.broadcast %74 : vector<2x1x128xf32> to vector<2x16x128xf32>
    %76 = arith.subf %73, %75 : vector<2x16x128xf32>
    %77 = vector.shape_cast %76 : vector<2x16x128xf32> to vector<32x128xf32>
    %78 = vector.broadcast %54 : vector<32x1xf32> to vector<32x128xf32>
    %79 = arith.mulf %77, %78 : vector<32x128xf32>
    %80 = vector.broadcast %52 : vector<32x1xf32> to vector<32x128xf32>
    %81 = arith.addf %79, %80 : vector<32x128xf32>
    %82 = arith.truncf %81 : vector<32x128xf32> to vector<32x128xbf16>
    %c1 = arith.constant 1 : index
    %c0_26 = arith.constant 0 : index
    %c0_27 = arith.constant 0 : index
    %83 = vector.load %arg5[%c1, %c0_26, %c0_27] : memref<2x128x128xbf16, #tpu.memory_space<vmem>>, vector<1x128x128xbf16>
    %84 = vector.shape_cast %83 : vector<1x128x128xbf16> to vector<128x128xbf16>
    %cst_28 = arith.constant dense<0.000000e+00> : vector<32x128xf32>
    %85 = tpu.matmul %82, %84, %cst_28 {dimension_numbers = #tpu.dot_dimension_numbers<[1], [0], [0], [1], [0, 0, 1, 1], [], []>} : vector<32x128xbf16>, vector<128x128xbf16>, vector<32x128xf32> -> vector<32x128xf32>
    %c1_29 = arith.constant 1 : index
    %c0_30 = arith.constant 0 : index
    %c0_31 = arith.constant 0 : index
    %86 = vector.load %arg6[%c1_29, %c0_30, %c0_31] : memref<2x1x128xf32, #tpu.memory_space<vmem>>, vector<1x1x128xf32>
    %87 = vector.shape_cast %86 : vector<1x1x128xf32> to vector<1x128xf32>
    %88 = vector.broadcast %87 : vector<1x128xf32> to vector<32x128xf32>
    %89 = arith.addf %85, %88 : vector<32x128xf32>
    %90 = vector.broadcast %56 : vector<32x1xf32> to vector<32x128xf32>
    %91 = arith.mulf %90, %89 : vector<32x128xf32>
    %92 = arith.addf %50, %91 : vector<32x128xf32>
    %93 = arith.truncf %92 : vector<32x128xf32> to vector<32x128xbf16>
    %c0_32 = arith.constant 0 : index
    %c0_33 = arith.constant 0 : index
    %94 = vector.load %arg7[%c0_32, %c0_33] : memref<128x128xbf16, #tpu.memory_space<vmem>>, vector<128x128xbf16>
    %cst_34 = arith.constant dense<0.000000e+00> : vector<32x128xf32>
    %95 = tpu.matmul %93, %94, %cst_34 {dimension_numbers = #tpu.dot_dimension_numbers<[1], [0], [0], [1], [0, 0, 1, 1], [], []>} : vector<32x128xbf16>, vector<128x128xbf16>, vector<32x128xf32> -> vector<32x128xf32>
    %c0_35 = arith.constant 0 : index
    %c0_36 = arith.constant 0 : index
    %96 = vector.load %arg8[%c0_35, %c0_36] : memref<1x128xf32, #tpu.memory_space<vmem>>, vector<1x128xf32>
    %97 = vector.broadcast %96 : vector<1x128xf32> to vector<32x128xf32>
    %98 = arith.addf %95, %97 : vector<32x128xf32>
    %99 = vector.shape_cast %98 : vector<32x128xf32> to vector<2x16x128xf32>
    %c0_37 = arith.constant 0 : index
    %c0_38 = arith.constant 0 : index
    %c0_39 = arith.constant 0 : index
    %100 = vector.load %arg9[%c0_37, %c0_38, %c0_39] : memref<2x16x128xf32, #tpu.memory_space<vmem>>, vector<2x16x128xf32>
    tpu.vector_store %arg9[%c0_37, %c0_38, %c0_39], %99 {strides = array<i32>} : memref<2x16x128xf32, #tpu.memory_space<vmem>>, vector<2x16x128xf32>,
    return
  }
  func.func @transform_0(%arg0: i32) -> (i32, i32, i32) {
    %c0_i32 = arith.constant 0 : i32
    %c0_i32_0 = arith.constant 0 : i32
    %c0_i32_1 = arith.constant 0 : i32
    return %arg0, %c0_i32, %c0_i32_0 : i32, i32, i32
  }
  func.func @transform_1(%arg0: i32) -> (i32, i32, i32) {
    %c0_i32 = arith.constant 0 : i32
    %c0_i32_0 = arith.constant 0 : i32
    %c0_i32_1 = arith.constant 0 : i32
    return %arg0, %c0_i32, %c0_i32_0 : i32, i32, i32
  }
  func.func @transform_2(%arg0: i32) -> (i32, i32) {
    %c0_i32 = arith.constant 0 : i32
    %c0_i32_0 = arith.constant 0 : i32
    %c0_i32_1 = arith.constant 0 : i32
    return %c0_i32, %c0_i32_0 : i32, i32
  }
  func.func @transform_3(%arg0: i32) -> (i32, i32) {
    %c0_i32 = arith.constant 0 : i32
    %c0_i32_0 = arith.constant 0 : i32
    %c0_i32_1 = arith.constant 0 : i32
    return %c0_i32, %c0_i32_0 : i32, i32
  }
  func.func @transform_4(%arg0: i32) -> (i32, i32, i32) {
    %c0_i32 = arith.constant 0 : i32
    %c0_i32_0 = arith.constant 0 : i32
    %c0_i32_1 = arith.constant 0 : i32
    %c0_i32_2 = arith.constant 0 : i32
    return %c0_i32, %c0_i32_0, %c0_i32_1 : i32, i32, i32
  }
  func.func @transform_5(%arg0: i32) -> (i32, i32, i32) {
    %c0_i32 = arith.constant 0 : i32
    %c0_i32_0 = arith.constant 0 : i32
    %c0_i32_1 = arith.constant 0 : i32
    %c0_i32_2 = arith.constant 0 : i32
    return %c0_i32, %c0_i32_0, %c0_i32_1 : i32, i32, i32
  }
  func.func @transform_6(%arg0: i32) -> (i32, i32) {
    %c0_i32 = arith.constant 0 : i32
    %c0_i32_0 = arith.constant 0 : i32
    %c0_i32_1 = arith.constant 0 : i32
    return %c0_i32, %c0_i32_0 : i32, i32
  }
  func.func @transform_7(%arg0: i32) -> (i32, i32) {
    %c0_i32 = arith.constant 0 : i32
    %c0_i32_0 = arith.constant 0 : i32
    %c0_i32_1 = arith.constant 0 : i32
    return %c0_i32, %c0_i32_0 : i32, i32
  }
  func.func @transform_8(%arg0: i32) -> (i32, i32, i32) {
    %c0_i32 = arith.constant 0 : i32
    %c0_i32_0 = arith.constant 0 : i32
    %c0_i32_1 = arith.constant 0 : i32
    return %arg0, %c0_i32, %c0_i32_0 : i32, i32, i32
  }
}

</mosaic_0001>

<bundles_post_ra>
// kernel: _lambda_.1
= control target key start
LH: loop header
LB: loop body
LE: loop exit
PB: predicated region body
PF: predicated region fallthrough
CT: control target
= control target key end

     0   :  { %v1073_v2 = vmov 0   ;;  %s1382_s0 = inlined_call_operand.vmem [shape: f32[2,16,128], index: 0, kind: input, shape index: {}]   ;;  %s1383_s1 = inlined_call_operand.vmem [shape: f32[2,96,1], index: 1, kind: input, shape index: {}]   ;;  %s1384_s2 = inlined_call_operand.vmem [shape: bf16[128,128], index: 2, kind: input, shape index: {}]   ;;  %s1385_s3 = inlined_call_operand.vmem [shape: f32[1,128], index: 3, kind: input, shape index: {}]   ;;  %s1386_s4 = inlined_call_operand.vmem [shape: bf16[2,128,128], index: 4, kind: input, shape index: {}]   ;;  %s1387_s5 = inlined_call_operand.vmem [shape: f32[2,1,128], index: 5, kind: input, shape index: {}]   ;;  %s1388_s6 = inlined_call_operand.vmem [shape: bf16[128,128], index: 6, kind: input, shape index: {}]   ;;  %s1389_s7 = inlined_call_operand.vmem [shape: f32[1,128], index: 7, kind: input, shape index: {}]   ;;  %s1390_s8 = inlined_call_operand.hbm [shape: f32[2,16,128], index: 8, kind: output, shape index: {}]  }
   0x1   :  { %v1009_v0 = vld [vmem:[%s1384_s2] sm:$0xff]   ;;  %v1010_v1 = vld [vmem:[%s1384_s2 + $0x8] sm:$0xff]   ;;  %1008 = vset.pattern.permute.xlu1 %v1073_v2  ;;  %1007 = vset.pattern.permute.xlu0 %v1073_v2  ;;  %v1011_v3 = vld [vmem:[%s1384_s2 + $0x10] sm:$0xff]  }
   0x2   :  { %923 = vmatprep.subr.bf16.mxu0 %v1009_v0  ;;  %v1012_v4 = vld [vmem:[%s1384_s2 + $0x18] sm:$0xff]   ;;  %v31_v5 = vld [vmem:[%s1382_s0] sm:$0xff]  ;;  %v32_v6 = vld [vmem:[%s1382_s0 + $0x8] sm:$0xff] }
   0x3   :  { %924 = vmatpush3.bf16.msra.mxu0 %v1009_v0  ;;  %v35_v7 = vpack.c.bf16 %v32_v6, %v31_v5  ;;  %v171_v8 = vld [vmem:[%s1383_s1 + $0x70] sm:$0xff]  ;;  %v172_v10 = vld [vmem:[%s1383_s1 + $0x78] sm:$0xff]  ;;  %v1013_v12 = vld [vmem:[%s1384_s2 + $0x20] sm:$0xff]  }
   0x4   :  { %925 = vmatprep.subr.bf16.mxu0 %v1010_v1  ;;  %v159_v9 = vld [vmem:[%s1383_s1 + $0x10] sm:$0xff]  ;;  %248 = vperm.xlu1 %1008, %v171_v8   ;;  %v160_v11 = vld [vmem:[%s1383_s1 + $0x18] sm:$0xff]  ;;  %v158_v13 = vld [vmem:[%s1383_s1 + $0x8] sm:$0xff] }
   0x5   :  { %238 = vperm.xlu0 %1007, %v159_v9   ;;  %939 = vmatprep.mubr.bf16.mxu0 %v35_v7  ;;  %v157_v14 = vld [vmem:[%s1383_s1] sm:$0xff]  ;;  %v1014_v15 = vld [vmem:[%s1384_s2 + $0x28] sm:$0xff]   ;;  %v1015_v18 = vld [vmem:[%s1384_s2 + $0x30] sm:$0xff]  }
   0x6   :  { %v170_v16 = vld [vmem:[%s1383_s1 + $0x68] sm:$0xff]  ;;  %v169_v17 = vld [vmem:[%s1383_s1 + $0x60] sm:$0xff]  ;;  %v1016_v21 = vld [vmem:[%s1384_s2 + $0x38] sm:$0xff]  }
   0x7   :  { %926 = vmatpush3.bf16.msra.mxu0 %v1010_v1  ;;  %v162_v19 = vld [vmem:[%s1383_s1 + $0x28] sm:$0xff]  ;;  %v161_v20 = vld [vmem:[%s1383_s1 + $0x20] sm:$0xff]  ;;  %v33_v22 = vld [vmem:[%s1382_s0 + $0x10] sm:$0xff] }
   0x8   :  { %927 = vmatprep.subr.bf16.mxu0 %v1011_v3  ;;  %253 = vperm.xlu1 %1008, %v172_v10   ;;  %v34_v23 = vld [vmem:[%s1382_s0 + $0x18] sm:$0xff]  ;;  %v174_v24 = vld [vmem:[%s1383_s1 + $0x88] sm:$0xff]  ;;  %v173_v25 = vld [vmem:[%s1383_s1 + $0x80] sm:$0xff] }
   0x9   :  { %243 = vperm.xlu0 %1007, %v160_v11   ;;  %v166_v26 = vld [vmem:[%s1383_s1 + $0x48] sm:$0xff]  ;;  %v36_v27 = vpack.c.bf16 %v34_v23, %v33_v22  ;;  %v165_v28 = vld [vmem:[%s1383_s1 + $0x40] sm:$0xff] }
   0xb   :  { %928 = vmatpush3.bf16.msra.mxu0 %v1011_v3 }
   0xc   :  { %929 = vmatprep.subr.bf16.mxu0 %v1012_v4  ;;  %267 = vperm.xlu1 %1008, %v158_v13  }
   0xd   :  { %262 = vperm.xlu0 %1007, %v157_v14  }
   0xf   :  { %930 = vmatpush3.bf16.msra.mxu0 %v1012_v4 }
  0x10   :  { %931 = vmatprep.subr.bf16.mxu0 %v1013_v12  ;;  %277 = vperm.xlu1 %1008, %v170_v16  }
  0x11   :  { %272 = vperm.xlu0 %1007, %v169_v17  }
  0x13   :  { %932 = vmatpush3.bf16.msra.mxu0 %v1013_v12 }
  0x14   :  { %933 = vmatprep.subr.bf16.mxu0 %v1014_v15  ;;  %413 = vperm.xlu1 %1008, %v162_v19  }
  0x15   :  { %408 = vperm.xlu0 %1007, %v161_v20  }
  0x17   :  { %934 = vmatpush3.bf16.msra.mxu0 %v1014_v15 }
  0x18   :  { %935 = vmatprep.subr.bf16.mxu0 %v1015_v18  ;;  %423 = vperm.xlu1 %1008, %v174_v24  }
  0x19   :  { %418 = vperm.xlu0 %1007, %v173_v25  }
  0x1b   :  { %936 = vmatpush3.bf16.msra.mxu0 %v1015_v18 }
  0x1c   :  { %937 = vmatprep.subr.bf16.mxu0 %v1016_v21 }
  0x1f   :  { %938 = vmatpush3.bf16.msra.mxu0 %v1016_v21 }
  0x20   :  { %13 = vsyncpa [#allocation3], 0  ;;  %495 = vperm.xlu1 %1008, %v166_v26   ;;  %490 = vperm.xlu0 %1007, %v165_v28   ;;  %v178_v29 = vld [vmem:[%s1383_s1 + $0xa8] sm:$0xff]  ;;  %v177_v30 = vld [vmem:[%s1383_s1 + $0xa0] sm:$0xff]  ;;  %s1074_s9 = smov [#allocation2]  }
  0x21   :  { %v164_v31 = vld [vmem:[%s1383_s1 + $0x38] sm:$0xff]  ;;  %v163_v32 = vld [vmem:[%s1383_s1 + $0x30] sm:$0xff]  ;;  %v1017_v39 = vld [vmem:[%s1386_s4] sm:$0xff]   ;;  %s819_s0 = sshll.u32 %s1074_s9, 4  ;;  %s820_s0 = int_to_ptr.vmem [resolvable:$true] %s819_s0 }
  0x22   :  { %940 = vmatmul.mubr.bf16.vlgmr.msra.gmra.mrb[0].mxu0 %v36_v27  ;;  %v176_v33 = vld [vmem:[%s1383_s1 + $0x98] sm:$0xff]  ;;  %v175_v34 = vld [vmem:[%s1383_s1 + $0x90] sm:$0xff]  ;;  %943 = vmatprep.subr.bf16.mxu1 %v1017_v39  ;;  %v1018_v40 = vld [vmem:[%s1386_s4 + $0x8] sm:$0xff]   ;;  %s1049_s10 = scalar_lea.vmem %s820_s0, 512  ;;  %p1054_p1 = scmp.lt.s32.totalorder %s820_s0, %s820_s0 }
  0x23   :  { %v168_v35 = vld [vmem:[%s1383_s1 + $0x58] sm:$0xff]  ;;  %v167_v36 = vld [vmem:[%s1383_s1 + $0x50] sm:$0xff]  ;;  %944 = vmatpush3.bf16.msra.mxu1 %v1017_v39  ;;  %v1021_v43 = vld [vmem:[%s1386_s4 + $0x20] sm:$0xff]   ;;  %p1050_p0 = scmp.ne.s32.totalorder %s820_s0, %s1049_s10  ;;  %p1055_p2 = scmp.lt.s32.totalorder %s1049_s10, %s1049_s10 }
  0x24   :  { %505 = vperm.xlu1 %1008, %v178_v29   ;;  %500 = vperm.xlu0 %1007, %v177_v30   ;;  %v180_v37 = vld [vmem:[%s1383_s1 + $0xb8] sm:$0xff]  ;;  %v179_v38 = vld [vmem:[%s1383_s1 + $0xb0] sm:$0xff]  ;;  %v1022_v44 = vld [vmem:[%s1386_s4 + $0x28] sm:$0xff]  }
  0x25   :  { %945 = vmatprep.subr.bf16.mxu1 %v1018_v40  ;;  %v1019_v41 = vld [vmem:[%s1386_s4 + $0x10] sm:$0xff]   ;;  %v1020_v42 = vld [vmem:[%s1386_s4 + $0x18] sm:$0xff]   ;;  %v830_v47 = vld [vmem:[%s1385_s3] ss:$0 sm:$0xff]  ;;  %p1056_p3 = por %p1055_p2, %p1054_p1 }
  0x26   :  { %v1023_v45 = vld [vmem:[%s1386_s4 + $0x30] sm:$0xff]   ;;  %v1024_v46 = vld [vmem:[%s1386_s4 + $0x38] sm:$0xff]  }
  0x27   :  { %946 = vmatpush3.bf16.msra.mxu1 %v1018_v40  ;;  %p1057_p4 = pnand %p1056_p3, %p1050_p0 }
  0x28   :  { %519 = vperm.xlu1 %1008, %v164_v31   ;;  %514 = vperm.xlu0 %1007, %v163_v32  }
  0x29   :  { %947 = vmatprep.subr.bf16.mxu1 %v1019_v41 }
  0x2b   :  { %948 = vmatpush3.bf16.msra.mxu1 %v1019_v41 }
  0x2c   :  { %529 = vperm.xlu1 %1008, %v176_v33   ;;  %524 = vperm.xlu0 %1007, %v175_v34  }
  0x2d   :  { %949 = vmatprep.subr.bf16.mxu1 %v1020_v42 }
  0x2f   :  { %950 = vmatpush3.bf16.msra.mxu1 %v1020_v42 }
  0x30   :  { %667 = vperm.xlu1 %1008, %v168_v35   ;;  %662 = vperm.xlu0 %1007, %v167_v36  }
  0x31   :  { %951 = vmatprep.subr.bf16.mxu1 %v1021_v43 }
  0x33   :  { %952 = vmatpush3.bf16.msra.mxu1 %v1021_v43 }
  0x34   :  { %677 = vperm.xlu1 %1008, %v180_v37   ;;  %672 = vperm.xlu0 %1007, %v179_v38  }
  0x35   :  { %953 = vmatprep.subr.bf16.mxu1 %v1022_v44 }
  0x37   :  { %954 = vmatpush3.bf16.msra.mxu1 %v1022_v44 }
  0x38   :  { %955 = vmatprep.subr.bf16.mxu1 %v1023_v45 }
  0x3b   :  { %956 = vmatpush3.bf16.msra.mxu1 %v1023_v45 }
  0x3c   :  { %957 = vmatprep.subr.bf16.mxu1 %v1024_v46 }
  0x3f   :  { %958 = vmatpush3.bf16.msra.mxu1 %v1024_v46 }
  0x83   :  { %v249_v32 = vpop.permute.xlu1 %248 }
  0x84   :  { %v239_v33 = vpop.permute.xlu0 %238 }
  0x87   :  { %v254_v36 = vpop.permute.xlu1 %253 }
  0x88   :  { %v244_v37 = vpop.permute.xlu0 %243 }
  0x8b   :  { %v268_v39 = vpop.permute.xlu1 %267 }
  0x8c   :  { %v263_v40 = vpop.permute.xlu0 %262 }
  0xf5   :  { %v941_v48 = vpop.f32.mrb[0].mxu0 }
  0xf6   :  { %v1257_v49 = vadd.f32 %v941_v48, %v830_v47  ;;  %v142_v50 = vpop.f32.mrb[1].mxu0 }
  0xf7   :  { %v1259_v51 = vadd.f32 %v830_v47, %v142_v50  ;;  %v942_v52 = vpop.f32.mrb[2].mxu0 }
  0xf8   :  { %v1261_v53 = vadd.f32 %v942_v52, %v830_v47  ;;  %v145_v54 = vpop.f32.mrb[3].mxu0  ;;  %v200_v56 = vmul.f32 %v1257_v49, %v1257_v49 }
  0xf9   :  { %v1263_v55 = vadd.f32 %v830_v47, %v145_v54  ;;  %v198_v59 = vmul.f32 %v1259_v51, %v1259_v51 }
  0xfa   :  { %v188_v57 = vadd.f32 %v1261_v53, %v1257_v49  ;;  %v201_v58 = vmul.f32 %v1261_v53, %v1261_v53 }
  0xfb   :  { %v181_v60 = vadd.f32 %v1263_v55, %v1259_v51  ;;  %v199_v61 = vmul.f32 %v1263_v55, %v1263_v55 }
  0xfc   :  { %v189_v62 = vrot.slane %v188_v57, 4  ;;  %v209_v63 = vadd.f32 %v201_v58, %v200_v56  ;;  %v278_v58 = vpop.permute.xlu1 %277 }
  0xfd   :  { %v182_v0 = vrot.slane %v181_v60, 4  ;;  %v202_v1 = vadd.f32 %v199_v61, %v198_v59  ;;  %v273_v59 = vpop.permute.xlu0 %272 }
  0xfe   :  { %v190_v2 = vadd.f32 %v189_v62, %v188_v57  ;;  %v210_v3 = vrot.slane %v209_v63, 4 }
  0xff   :  { %v183_v4 = vadd.f32 %v182_v0, %v181_v60  ;;  %v203_v5 = vrot.slane %v202_v1, 4 }
 0x100   :  { %v191_v6 = vrot.slane %v190_v2, 2  ;;  %v211_v7 = vadd.f32 %v210_v3, %v209_v63 }
 0x101   :  { %v184_v8 = vrot.slane %v183_v4, 2  ;;  %v204_v9 = vadd.f32 %v203_v5, %v202_v1  ;;  %v1026_v5 = vld [vmem:[%s1386_s4 + $0x48] sm:$0xff]  }
 0x102   :  { %v192_v10 = vadd.f32 %v191_v6, %v190_v2  ;;  %v212_v11 = vrot.slane %v211_v7, 2  ;;  %v1027_v6 = vld [vmem:[%s1386_s4 + $0x50] sm:$0xff]  }
 0x103   :  { %v205_v12 = vrot.slane %v204_v9, 2  ;;  %v185_v13 = vadd.f32 %v184_v8, %v183_v4  ;;  %v1025_v4 = vld [vmem:[%s1386_s4 + $0x40] sm:$0xff]  }
 0x104   :  { %v193_v14 = vrot.slane %v192_v10, 1  ;;  %v213_v15 = vadd.f32 %v212_v11, %v211_v7  ;;  %963 = vmatprep.subr.bf16.mxu0 %v1025_v4  ;;  %v1028_v7 = vld [vmem:[%s1386_s4 + $0x58] sm:$0xff]   ;;  %v1029_v8 = vld [vmem:[%s1386_s4 + $0x60] sm:$0xff]  }
 0x105   :  { %v206_v16 = vadd.f32 %v205_v12, %v204_v9  ;;  %v186_v17 = vrot.slane %v185_v13, 1  ;;  %964 = vmatpush3.bf16.msra.mxu0 %v1025_v4  ;;  %v1030_v9 = vld [vmem:[%s1386_s4 + $0x68] sm:$0xff]   ;;  %v1032_v11 = vld [vmem:[%s1386_s4 + $0x78] sm:$0xff]   ;;  %v1033_v12 = vld [vmem:[%s1388_s6] sm:$0xff]  }
 0x106   :  { %v194_v18 = vadd.f32 %v193_v14, %v192_v10  ;;  %v214_v19 = vrot.slane %v213_v15, 1  ;;  %965 = vmatprep.subr.bf16.mxu0 %v1026_v5  ;;  %v1031_v10 = vld [vmem:[%s1386_s4 + $0x70] sm:$0xff]   ;;  %983 = vmatprep.subr.bf16.mxu1 %v1033_v12 }
 0x107   :  { %v207_v20 = vrot.slane %v206_v16, 1  ;;  %v187_v21 = vadd.f32 %v186_v17, %v185_v13  ;;  %v1034_v13 = vld [vmem:[%s1388_s6 + $0x8] sm:$0xff]   ;;  %v1035_v14 = vld [vmem:[%s1388_s6 + $0x10] sm:$0xff]   ;;  %v409_v17 = vpop.permute.xlu0 %408 }
 0x108   :  { %v197_v22 = vmul.f32 0.0625, %v194_v18  ;;  %v215_v23 = vadd.f32 %v214_v19, %v213_v15  ;;  %v1036_v15 = vld [vmem:[%s1388_s6 + $0x18] sm:$0xff]   ;;  %v414_v18 = vpop.permute.xlu1 %413  ;;  %v839_v19 = vld [vmem:[%s1387_s5] ss:$0 sm:$0xff] }
 0x109   :  { %v196_v24 = vmul.f32 0.0625, %v187_v21  ;;  %v208_v25 = vadd.f32 %v207_v20, %v206_v16  ;;  %966 = vmatpush3.bf16.msra.mxu0 %v1026_v5  ;;  %v1037_v16 = vld [vmem:[%s1388_s6 + $0x20] sm:$0xff]  }
 0x10a   :  { %v217_v26 = vmul.f32 0.0625, %v215_v23  ;;  %v219_v27 = vmul.f32 %v197_v22, %v197_v22  ;;  %967 = vmatprep.subr.bf16.mxu0 %v1027_v6 }
 0x10b   :  { %v216_v28 = vmul.f32 0.0625, %v208_v25  ;;  %v218_v29 = vmul.f32 %v196_v24, %v196_v24  ;;  %v419_v23 = vpop.permute.xlu0 %418 }
 0x10c   :  { %v221_v30 = vsub.f32 %v217_v26, %v219_v27 }
 0x10d   :  { %v220_v31 = vsub.f32 %v216_v28, %v218_v29  ;;  %968 = vmatpush3.bf16.msra.mxu0 %v1027_v6  ;;  %v424_v29 = vpop.permute.xlu1 %423 }
 0x10e   :  { %v223_v34 = vadd.f32 1e-05, %v221_v30  ;;  %969 = vmatprep.subr.bf16.mxu0 %v1028_v7 }
 0x10f   :  { %v222_v35 = vadd.f32 1e-05, %v220_v31 }
 0x110   :  { %1041 = vrsqrt.f32 %v223_v34 }
 0x111   :  { %1043 = vrsqrt.f32 %v222_v35  ;;  %970 = vmatpush3.bf16.msra.mxu0 %v1028_v7 }
 0x112   :  { %971 = vmatprep.subr.bf16.mxu0 %v1029_v8 }
 0x115   :  { %972 = vmatpush3.bf16.msra.mxu0 %v1029_v8 }
 0x116   :  { %973 = vmatprep.subr.bf16.mxu0 %v1030_v9 }
 0x119   :  { %974 = vmatpush3.bf16.msra.mxu0 %v1030_v9 }
 0x11a   :  { %v1042_v38 = vpop.eup %1041  ;;  %975 = vmatprep.subr.bf16.mxu0 %v1031_v10 }
 0x11b   :  { %v1044_v41 = vpop.eup %1043  ;;  %v229_v42 = vmul.f32 %v1042_v38, %v1261_v53  ;;  %v228_v43 = vmul.f32 %v1042_v38, %v1257_v49  ;;  %v231_v44 = vmul.f32 %v1042_v38, %v197_v22 }
 0x11c   :  { %v226_v45 = vmul.f32 %v1044_v41, %v1259_v51  ;;  %v227_v46 = vmul.f32 %v1044_v41, %v1263_v55  ;;  %v230_v47 = vmul.f32 %v1044_v41, %v196_v24 }
 0x11d   :  { %v234_v48 = vsub.f32 %v228_v43, %v231_v44  ;;  %v235_v50 = vsub.f32 %v229_v42, %v231_v44  ;;  %976 = vmatpush3.bf16.msra.mxu0 %v1031_v10 }
 0x11e   :  { %v232_v52 = vsub.f32 %v226_v45, %v230_v47  ;;  %v233_v54 = vsub.f32 %v227_v46, %v230_v47  ;;  %977 = vmatprep.subr.bf16.mxu0 %v1032_v11 }
 0x11f   :  { %v258_v56 = vmul.f32 %v249_v32, %v234_v48  ;;  %v259_v57 = vmul.f32 %v254_v36, %v235_v50 }
 0x120   :  { %v256_v60 = vmul.f32 %v239_v33, %v232_v52  ;;  %v257_v61 = vmul.f32 %v244_v37, %v233_v54 }
 0x121   :  { %v282_v62 = vadd.f32 %v273_v59, %v258_v56  ;;  %v283_v63 = vadd.f32 %v278_v58, %v259_v57  ;;  %978 = vmatpush3.bf16.msra.mxu0 %v1032_v11 }
 0x122   :  { %v280_v0 = vadd.f32 %v263_v40, %v256_v60  ;;  %v281_v1 = vadd.f32 %v268_v39, %v257_v61 }
 0x123   :  { %v285_v3 = vpack.c.bf16 %v283_v63, %v282_v62 }
 0x124   :  { %v284_v2 = vpack.c.bf16 %v281_v1, %v280_v0 }
 0x126   :  { %959 = vmatprep.mubr.bf16.mxu1 %v284_v2 }
 0x127   :  { %960 = vmatmul.mubr.bf16.vlgmr.msra.gmra.mrb[0].mxu1 %v285_v3 }
 0x128   :  { %984 = vmatpush3.bf16.msra.mxu1 %v1033_v12 }
 0x129   :  { %985 = vmatprep.subr.bf16.mxu1 %v1034_v13 }
 0x12c   :  { %986 = vmatpush3.bf16.msra.mxu1 %v1034_v13 }
 0x12d   :  { %987 = vmatprep.subr.bf16.mxu1 %v1035_v14 }
 0x130   :  { %988 = vmatpush3.bf16.msra.mxu1 %v1035_v14  ;;  %v496_v14 = vpop.permute.xlu1 %495 }
 0x131   :  { %989 = vmatprep.subr.bf16.mxu1 %v1036_v15 }
 0x134   :  { %990 = vmatpush3.bf16.msra.mxu1 %v1036_v15  ;;  %v491_v15 = vpop.permute.xlu0 %490 }
 0x135   :  { %991 = vmatprep.subr.bf16.mxu1 %v1037_v16 }
 0x138   :  { %992 = vmatpush3.bf16.msra.mxu1 %v1037_v16 }
 0x1fa   :  { %v961_v20 = vpop.f32.mrb[0].mxu1 }
 0x1fb   :  { %v400_v21 = vadd.f32 %v961_v20, %v839_v19  ;;  %v391_v22 = vpop.f32.mrb[1].mxu1 }
 0x1fc   :  { %v392_v24 = vadd.f32 %v839_v19, %v391_v22  ;;  %v962_v25 = vpop.f32.mrb[2].mxu1 }
 0x1fd   :  { %v428_v26 = vmul.f32 %v419_v23, %v400_v21  ;;  %v403_v27 = vadd.f32 %v962_v25, %v839_v19  ;;  %v394_v28 = vpop.f32.mrb[3].mxu1 }
 0x1fe   :  { %v426_v30 = vmul.f32 %v409_v17, %v392_v24  ;;  %v395_v31 = vadd.f32 %v839_v19, %v394_v28  ;;  %v501_v19 = vpop.permute.xlu0 %500 }
 0x1ff   :  { %v1324_v32 = vadd.f32 %v428_v26, %v1257_v49  ;;  %v429_v33 = vmul.f32 %v424_v29, %v403_v27 }
 0x200   :  { %v1327_v34 = vadd.f32 %v426_v30, %v1259_v51  ;;  %v427_v35 = vmul.f32 %v414_v18, %v395_v31  ;;  %v506_v18 = vpop.permute.xlu1 %505 }
 0x201   :  { %v1330_v36 = vadd.f32 %v429_v33, %v1261_v53  ;;  %v452_v38 = vmul.f32 %v1324_v32, %v1324_v32 }
 0x202   :  { %v1333_v37 = vadd.f32 %v427_v35, %v1263_v55  ;;  %v450_v51 = vmul.f32 %v1327_v34, %v1327_v34  ;;  %v515_v22 = vpop.permute.xlu0 %514 }
 0x203   :  { %v441_v39 = vadd.f32 %v1330_v36, %v1324_v32  ;;  %v453_v49 = vmul.f32 %v1330_v36, %v1330_v36 }
 0x204   :  { %v434_v40 = vadd.f32 %v1333_v37, %v1327_v34  ;;  %v451_v53 = vmul.f32 %v1333_v37, %v1333_v37  ;;  %v520_v21 = vpop.permute.xlu1 %519 }
 0x205   :  { %v442_v55 = vrot.slane %v441_v39, 4  ;;  %v461_v41 = vadd.f32 %v453_v49, %v452_v38 }
 0x206   :  { %v435_v42 = vrot.slane %v434_v40, 4  ;;  %v454_v43 = vadd.f32 %v451_v53, %v450_v51  ;;  %v525_v51 = vpop.permute.xlu0 %524 }
 0x207   :  { %v443_v44 = vadd.f32 %v442_v55, %v441_v39  ;;  %v462_v45 = vrot.slane %v461_v41, 4 }
 0x208   :  { %v436_v46 = vadd.f32 %v435_v42, %v434_v40  ;;  %v455_v47 = vrot.slane %v454_v43, 4  ;;  %v530_v49 = vpop.permute.xlu1 %529 }
 0x209   :  { %v444_v48 = vrot.slane %v443_v44, 2  ;;  %v463_v50 = vadd.f32 %v462_v45, %v461_v41 }
 0x20a   :  { %v437_v52 = vrot.slane %v436_v46, 2  ;;  %v456_v54 = vadd.f32 %v455_v47, %v454_v43  ;;  %v1039_v47 = vld [vmem:[%s1388_s6 + $0x30] sm:$0xff]  }
 0x20b   :  { %v445_v56 = vadd.f32 %v444_v48, %v443_v44  ;;  %v464_v57 = vrot.slane %v463_v50, 2  ;;  %v1040_v48 = vld [vmem:[%s1388_s6 + $0x38] sm:$0xff]  }
 0x20c   :  { %v457_v58 = vrot.slane %v456_v54, 2  ;;  %v438_v59 = vadd.f32 %v437_v52, %v436_v46  ;;  %v1038_v46 = vld [vmem:[%s1388_s6 + $0x28] sm:$0xff]   ;;  %v668_v52 = vpop.permute.xlu1 %667 }
 0x20d   :  { %v446_v60 = vrot.slane %v445_v56, 1  ;;  %v465_v61 = vadd.f32 %v464_v57, %v463_v50  ;;  %993 = vmatprep.subr.bf16.mxu1 %v1038_v46  ;;  %v663_v50 = vpop.permute.xlu0 %662 }
 0x20e   :  { %v458_v62 = vadd.f32 %v457_v58, %v456_v54  ;;  %v439_v63 = vrot.slane %v438_v59, 1  ;;  %994 = vmatpush3.bf16.msra.mxu1 %v1038_v46  ;;  %v865_v54 = vld [vmem:[%s1387_s5 + $0x1] ss:$0 sm:$0xff] }
 0x20f   :  { %v447_v0 = vadd.f32 %v446_v60, %v445_v56  ;;  %v466_v1 = vrot.slane %v465_v61, 1  ;;  %995 = vmatprep.subr.bf16.mxu1 %v1039_v47 }
 0x210   :  { %v459_v2 = vrot.slane %v458_v62, 1  ;;  %v440_v3 = vadd.f32 %v439_v63, %v438_v59 }
 0x211   :  { %v449_v4 = vmul.f32 0.0625, %v447_v0  ;;  %v467_v5 = vadd.f32 %v466_v1, %v465_v61  ;;  %v673_v59 = vpop.permute.xlu0 %672  ;;  %v678_v1 = vpop.permute.xlu1 %677 }
 0x212   :  { %v448_v6 = vmul.f32 0.0625, %v440_v3  ;;  %v460_v7 = vadd.f32 %v459_v2, %v458_v62  ;;  %996 = vmatpush3.bf16.msra.mxu1 %v1039_v47 }
 0x213   :  { %v469_v8 = vmul.f32 0.0625, %v467_v5  ;;  %v471_v9 = vmul.f32 %v449_v4, %v449_v4  ;;  %997 = vmatprep.subr.bf16.mxu1 %v1040_v48 }
 0x214   :  { %v468_v10 = vmul.f32 0.0625, %v460_v7  ;;  %v470_v11 = vmul.f32 %v448_v6, %v448_v6 }
 0x215   :  { %v473_v12 = vsub.f32 %v469_v8, %v471_v9 }
 0x216   :  { %v472_v13 = vsub.f32 %v468_v10, %v470_v11  ;;  %998 = vmatpush3.bf16.msra.mxu1 %v1040_v48 }
 0x217   :  { %v475_v16 = vadd.f32 1e-05, %v473_v12  ;;  %v874_v12 = vld [vmem:[%s1389_s7] ss:$0 sm:$0xff] }
 0x218   :  { %v474_v17 = vadd.f32 1e-05, %v472_v13 }
 0x219   :  { %1045 = vrsqrt.f32 %v475_v16 }
 0x21a   :  { %1047 = vrsqrt.f32 %v474_v17 }
 0x223   :  { %v1046_v20 = vpop.eup %1045 }
 0x224   :  { %v1048_v23 = vpop.eup %1047  ;;  %v481_v24 = vmul.f32 %v1046_v20, %v1330_v36  ;;  %v480_v25 = vmul.f32 %v1046_v20, %v1324_v32  ;;  %v483_v26 = vmul.f32 %v1046_v20, %v449_v4 }
 0x225   :  { %v478_v27 = vmul.f32 %v1048_v23, %v1327_v34  ;;  %v479_v28 = vmul.f32 %v1048_v23, %v1333_v37  ;;  %v482_v29 = vmul.f32 %v1048_v23, %v448_v6 }
 0x226   :  { %v486_v30 = vsub.f32 %v480_v25, %v483_v26  ;;  %v487_v31 = vsub.f32 %v481_v24, %v483_v26 }
 0x227   :  { %v484_v33 = vsub.f32 %v478_v27, %v482_v29  ;;  %v485_v35 = vsub.f32 %v479_v28, %v482_v29 }
 0x228   :  { %v510_v38 = vmul.f32 %v501_v19, %v486_v30  ;;  %v511_v39 = vmul.f32 %v506_v18, %v487_v31 }
 0x229   :  { %v508_v40 = vmul.f32 %v491_v15, %v484_v33  ;;  %v509_v53 = vmul.f32 %v496_v14, %v485_v35 }
 0x22a   :  { %v534_v55 = vadd.f32 %v525_v51, %v510_v38  ;;  %v535_v41 = vadd.f32 %v530_v49, %v511_v39 }
 0x22b   :  { %v532_v42 = vadd.f32 %v515_v22, %v508_v40  ;;  %v533_v43 = vadd.f32 %v520_v21, %v509_v53 }
 0x22c   :  { %v537_v45 = vpack.c.bf16 %v535_v41, %v534_v55 }
 0x22d   :  { %v536_v44 = vpack.c.bf16 %v533_v43, %v532_v42 }
 0x22f   :  { %979 = vmatprep.mubr.bf16.mxu0 %v536_v44 }
 0x230   :  { %980 = vmatmul.mubr.bf16.vlgmr.msra.gmra.mrb[4].mxu0 %v537_v45 }
 0x303   :  { %v981_v56 = vpop.f32.mrb[4].mxu0 }
 0x304   :  { %v654_v57 = vadd.f32 %v981_v56, %v865_v54  ;;  %v645_v58 = vpop.f32.mrb[5].mxu0 }
 0x305   :  { %v646_v60 = vadd.f32 %v865_v54, %v645_v58  ;;  %v982_v61 = vpop.f32.mrb[6].mxu0 }
 0x306   :  { %v682_v62 = vmul.f32 %v673_v59, %v654_v57  ;;  %v657_v63 = vadd.f32 %v982_v61, %v865_v54  ;;  %v648_v0 = vpop.f32.mrb[7].mxu0 }
 0x307   :  { %v680_v2 = vmul.f32 %v663_v50, %v646_v60  ;;  %v649_v3 = vadd.f32 %v865_v54, %v648_v0 }
 0x308   :  { %v683_v4 = vmul.f32 %v678_v1, %v657_v63  ;;  %v686_v6 = vadd.f32 %v682_v62, %v1324_v32 }
 0x309   :  { %v681_v5 = vmul.f32 %v668_v52, %v649_v3  ;;  %v684_v8 = vadd.f32 %v680_v2, %v1327_v34 }
 0x30a   :  { %v687_v7 = vadd.f32 %v683_v4, %v1330_v36 }
 0x30b   :  { %v685_v9 = vadd.f32 %v681_v5, %v1333_v37 }
 0x30c   :  { %v689_v10 = vpack.c.bf16 %v687_v7, %v686_v6 }
 0x30d   :  { %v688_v11 = vpack.c.bf16 %v685_v9, %v684_v8 }
 0x30f   :  { %999 = vmatprep.mubr.bf16.mxu1 %v688_v11 }
 0x310   :  { %1000 = vmatmul.mubr.bf16.vlgmr.msra.gmra.mrb[4].mxu1 %v689_v10 }
 0x3e3   :  { %v1001_v13 = vpop.f32.mrb[4].mxu1 }
 0x3e4   :  { %v804_v14 = vadd.f32 %v1001_v13, %v874_v12  ;;  %v795_v15 = vpop.f32.mrb[5].mxu1 }
 0x3e5   :  { %v796_v32 = vadd.f32 %v874_v12, %v795_v15  ;;  %v1002_v16 = vpop.f32.mrb[6].mxu1 }
 0x3e6   :  { %812 = vst [vmem:[#allocation2 + $0x10] sm:$0xff] %v804_v14  ;;  %v807_v36 = vadd.f32 %v1002_v16, %v874_v12  ;;  %v798_v34 = vpop.f32.mrb[7].mxu1 }
 0x3e7   :  { %810 = vst [vmem:[#allocation2] sm:$0xff] %v796_v32  ;;  %v799_v37 = vadd.f32 %v874_v12, %v798_v34 }
 0x3e8   :  { %813 = vst [vmem:[#allocation2 + $0x18] sm:$0xff] %v807_v36 }
 0x3e9   :  { %811 = vst [vmem:[#allocation2 + $0x8] sm:$0xff] %v799_v37 }
 0x3ea   :  { %1060 = shalt.err (!%p1057_p4)
}
 0x3eb   :  { %s1061_s12 = scalar_lea.hbm %s1390_s8, 512 }
 0x3ec   :  { %p1062_p5 = scmp.ne.s32.totalorder %s1390_s8, %s1061_s12  ;;  %p1065_p6 = scmp.lt.u32.totalorder %s1061_s12, %s1390_s8 }
 0x3ee   :  { %p1067_p7 = pnand %p1065_p6, %p1062_p5 }
 0x3f0   :  { %1070 = shalt.err (!%p1067_p7)
}
 0x3f1   :  { %s1075_s16 = smov 128   ;;  %s1076_s17 = smov 8  }
 0x3f2   :  { %825 = dma.vmem_to_hbm [thread:$0]  %s820_s0, 512, %s1390_s8, [#allocation3], %s1075_s16, %s1075_s16, %s1076_s17  }
 0x3f3   :  { %1071 = dma.done.wait [#allocation3], 512  }
 0x3f4   :  { %1072 = vsyncadd [#allocation3], 4294966784 }
 0x3f5   :  { %829 = vsyncpa [#allocation3], 1 }

</bundles_post_ra>
